<compile_context>
chip_gen: v5e
topology: v5e:2x2
jax: 0.10.0
libtpu: 0.0.40
codegen_flags: <defaults>
</compile_context>

<pallas_src>
import functools

import jax
import jax.numpy as jnp
from jax.experimental import pallas as pl
from jax.experimental.pallas import tpu as pltpu


def _choose_tiles(rows, cols, itemsize, target_block_bytes, max_tile_cols=2048):
    """Pick (tile_rows, tile_cols).

    Every block dim is either a multiple of the native (sublane, lane) tile or
    equal to the full array dim, so the BlockSpec is always legal; boundary
    blocks (when the tile does not divide the dim) are masked by Pallas.
    """
    lane = 128
    sub = 16 if itemsize == 2 else 8

    # Lane tile: full width when it fits the cap (block == full dim is always
    # legal and keeps stores lane-dense), otherwise a 128-multiple cap.
    tile_cols = cols if cols <= max_tile_cols else max_tile_cols

    # Row tile: aim for ~target_block_bytes per streamed block.
    want_rows = max(sub, target_block_bytes // max(1, tile_cols * itemsize))
    if rows <= want_rows:
        tile_rows = rows                       # block == full dim
    else:
        tile_rows = (want_rows // sub) * sub   # sublane multiple, masked edge

    # v7x megacore: for big problems make sure there are enough grid steps to
    # keep both TensorCores busy on the leading "parallel" axis.
    if rows * cols * itemsize >= (16 << 20):
        while (tile_rows > 2 * sub
               and pl.cdiv(rows, tile_rows) * pl.cdiv(cols, tile_cols) < 8):
            tile_rows = max(sub, ((tile_rows // 2) // sub) * sub)

    return tile_rows, tile_cols


def _feature_mix_kernel(alpha_ref, feat_ref, saved_ref, o_ref):
    # alpha_ref: (tile_rows, 1) f32 block (re-fetched only when the row-stripe
    #            changes, since its block index depends only on i).
    # feat/saved/o refs: (tile_rows, tile_cols) blocks of the streamed arrays.
    a = alpha_ref[...].astype(o_ref.dtype)        # broadcast over the lane axis
    f = feat_ref[...]
    s = saved_ref[...]
    # (1 - a) * f + a * s  ==  f + a * (s - f)    (one fewer multiply)
    o_ref[...] = f + a * (s - f)


@functools.partial(jax.jit,
                   static_argnames=("target_block_bytes",),
                   donate_argnums=(0,))
def feature_mix_pallas(outputs, saved_feature, alpha, *, target_block_bytes=4 << 20):
    """Blend `outputs` with `saved_feature` using per-(b, c) alpha.

    outputs, saved_feature: (B, C, H, W)  (any float dtype; bf16 streams bf16)
    alpha:                  (B, C)  already scaled by mix_table/ratio and
                            rounded through float16 like the hook's .half().

    `outputs` is donated and the Pallas output aliases it, so the result
    reuses the caller's HBM allocation for this bandwidth-bound op.
    """
    B, C, H, W = outputs.shape
    rows, cols = B * C, H * W
    itemsize = jnp.dtype(outputs.dtype).itemsize
    tile_rows, tile_cols = _choose_tiles(rows, cols, itemsize, target_block_bytes)

    feat2 = outputs.reshape(rows, cols)            # view; no pad/copy
    sav2 = saved_feature.reshape(rows, cols)
    a2 = alpha.reshape(rows, 1).astype(jnp.float32)

    grid = (pl.cdiv(rows, tile_rows), pl.cdiv(cols, tile_cols))

    res = pl.pallas_call(
        _feature_mix_kernel,
        out_shape=jax.ShapeDtypeStruct((rows, cols), outputs.dtype),
        grid=grid,
        in_specs=[
            pl.BlockSpec((tile_rows, 1), lambda i, j: (i, 0)),          # alpha
            pl.BlockSpec((tile_rows, tile_cols), lambda i, j: (i, j)),  # feat
            pl.BlockSpec((tile_rows, tile_cols), lambda i, j: (i, j)),  # saved
        ],
        out_specs=pl.BlockSpec((tile_rows, tile_cols), lambda i, j: (i, j)),
        input_output_aliases={1: 0},   # result overwrites `outputs` in place
        compiler_params=pltpu.CompilerParams(
            dimension_semantics=("parallel", "parallel"),
            vmem_limit_bytes=48 << 20,  # 3 streams x 2 bufs x ~4 MiB + alpha
        ),
    )(a2, feat2, sav2)

    return res.reshape(B, C, H, W)


def make_mix_table(key, batch_size, module_num, prob):
    """Deterministic stand-in for start_feature_mix(): per-batch random subset
    of modules gets mix_table entry 1.0."""
    sample_module_num = int(round(module_num * prob))
    table = jnp.zeros((batch_size, module_num), dtype=jnp.float32)
    for bdx in range(batch_size):
        key, sub = jax.random.split(key)
        layer_idx = jax.random.permutation(sub, module_num)[:sample_module_num]
        table = table.at[bdx, layer_idx].set(1.0)
    return table


if __name__ == "__main__":
    # Small, deterministic shapes consistent with the hook: NCHW features.
    B, C, H, W = 2, 4, 16, 16
    module_num, module_idx, prob, ratio = 6, 2, 0.5, 0.5

    key = jax.random.PRNGKey(0)
    k_out, k_sav, k_rand, k_tbl, k_o2, k_s2, k_a2 = jax.random.split(key, 7)

    outputs = jax.random.normal(k_out, (B, C, H, W), dtype=jnp.float32)
    saved_feature = jax.random.normal(k_sav, (B, C, H, W), dtype=jnp.float32)

    # a = mix_table[:, idx:idx+1] * rand(B, C) * ratio, then `.half()` rounding.
    mix_table = make_mix_table(k_tbl, B, module_num, prob)
    rand_bc = jax.random.uniform(k_rand, (B, C), dtype=jnp.float32)
    a = mix_table[:, module_idx:module_idx + 1] * rand_bc * ratio
    a = a.astype(jnp.float16).astype(jnp.float32)

    # Reference computed before the kernel call (outputs is donated).
    a4 = a.reshape(B, C, 1, 1)
    ref = jax.block_until_ready((1.0 - a4) * outputs + a4 * saved_feature)

    result = jax.block_until_ready(feature_mix_pallas(outputs, saved_feature, a))
    assert result.shape == (B, C, H, W)
    assert result.dtype == ref.dtype
    assert jnp.allclose(result, ref, atol=1e-5, rtol=1e-5)

    # Odd shapes (rows/cols not lane/sublane aligned) exercise the masked
    # boundary-block path (no pad/slice round-trip anymore).
    B2, C2, H2, W2 = 2, 3, 7, 7
    out_b = jax.random.normal(k_o2, (B2, C2, H2, W2), dtype=jnp.float32)
    sav_b = jax.random.normal(k_s2, (B2, C2, H2, W2), dtype=jnp.float32)
    alpha_b = (jax.random.uniform(k_a2, (B2, C2)) * ratio)
    alpha_b = alpha_b.astype(jnp.float16).astype(jnp.float32)
    a4b = alpha_b.reshape(B2, C2, 1, 1)
    ref_b = jax.block_until_ready((1.0 - a4b) * out_b + a4b * sav_b)

    res_b = jax.block_until_ready(feature_mix_pallas(out_b, sav_b, alpha_b))
    assert jnp.allclose(res_b, ref_b, atol=1e-5, rtol=1e-5)

    # TODO(synk): FeatureMix.forward delegates to an arbitrary wrapped
    # self.model(x, targets) and uses runtime forward hooks / record-mode state;
    # only the feature-mix blend (the compute this module adds) is a kernel.
    print("KERNEL_OK")
</pallas_src>

<mosaic_0001>
module attributes {stable_mosaic.version = 11 : i64} {
  func.func @_feature_mix_kernel(%arg0: i32, %arg1: i32, %arg2: memref<8x1xf32, #tpu.memory_space<vmem>>, %arg3: memref<8x256xf32, #tpu.memory_space<vmem>>, %arg4: memref<8x256xf32, #tpu.memory_space<vmem>>, %arg5: memref<8x256xf32, #tpu.memory_space<vmem>>) attributes {dimension_semantics = [#tpu.dimension_semantics<parallel>, #tpu.dimension_semantics<parallel>], iteration_bounds = array<i64: 1, 1>, scalar_prefetch = 0 : i64, scratch_operands = 0 : i64, tpu.core_type = #tpu.core_type<tc>, window_params = [{transform_indices = @transform_0, window_bounds = array<i64: 8, 1>}, {transform_indices = @transform_1, window_bounds = array<i64: 8, 256>}, {transform_indices = @transform_2, window_bounds = array<i64: 8, 256>}, {transform_indices = @transform_3, window_bounds = array<i64: 8, 256>}]} {
    %c0 = arith.constant 0 : index
    %c0_0 = arith.constant 0 : index
    %0 = vector.load %arg2[%c0, %c0_0] : memref<8x1xf32, #tpu.memory_space<vmem>>, vector<8x1xf32>
    %c0_1 = arith.constant 0 : index
    %c0_2 = arith.constant 0 : index
    %1 = vector.load %arg3[%c0_1, %c0_2] : memref<8x256xf32, #tpu.memory_space<vmem>>, vector<8x256xf32>
    %c0_3 = arith.constant 0 : index
    %c0_4 = arith.constant 0 : index
    %2 = vector.load %arg4[%c0_3, %c0_4] : memref<8x256xf32, #tpu.memory_space<vmem>>, vector<8x256xf32>
    %3 = arith.subf %2, %1 : vector<8x256xf32>
    %4 = vector.broadcast %0 : vector<8x1xf32> to vector<8x256xf32>
    %5 = arith.mulf %4, %3 : vector<8x256xf32>
    %6 = arith.addf %1, %5 : vector<8x256xf32>
    %c0_5 = arith.constant 0 : index
    %c0_6 = arith.constant 0 : index
    %7 = vector.load %arg5[%c0_5, %c0_6] : memref<8x256xf32, #tpu.memory_space<vmem>>, vector<8x256xf32>
    tpu.vector_store %arg5[%c0_5, %c0_6], %6 {strides = array<i32>} : memref<8x256xf32, #tpu.memory_space<vmem>>, vector<8x256xf32>,
    return
  }
  func.func @transform_0(%arg0: i32, %arg1: i32) -> (i32, i32) {
    %c0_i32 = arith.constant 0 : i32
    %c0_i32_0 = arith.constant 0 : i32
    return %arg0, %c0_i32 : i32, i32
  }
  func.func @transform_1(%arg0: i32, %arg1: i32) -> (i32, i32) {
    %c0_i32 = arith.constant 0 : i32
    return %arg0, %arg1 : i32, i32
  }
  func.func @transform_2(%arg0: i32, %arg1: i32) -> (i32, i32) {
    %c0_i32 = arith.constant 0 : i32
    return %arg0, %arg1 : i32, i32
  }
  func.func @transform_3(%arg0: i32, %arg1: i32) -> (i32, i32) {
    %c0_i32 = arith.constant 0 : i32
    return %arg0, %arg1 : i32, i32
  }
}

</mosaic_0001>

<bundles_post_ra>
// kernel: feature_mix_pallas.1
= control target key start
LH: loop header
LB: loop body
LE: loop exit
PB: predicated region body
PF: predicated region fallthrough
CT: control target
= control target key end

     0   :  { %v38_v0 = vmov 0   ;;  %s80_s0 = inlined_call_operand.vmem [shape: f32[8,1], index: 0, kind: input, shape index: {}]   ;;  %s81_s1 = inlined_call_operand.vmem [shape: f32[8,256], index: 1, kind: input, shape index: {}, may-alias: {1,3}]   ;;  %s82_s2 = inlined_call_operand.vmem [shape: f32[8,256], index: 2, kind: input, shape index: {}]   ;;  %s83_s3 = inlined_call_operand.vmem [shape: f32[8,256], index: 3, kind: output, shape index: {}, may-alias: {1,3}]  }
   0x1   :  { %37 = vset.pattern.permute.xlu0 %v38_v0  ;;  %v14_v1 = vld [vmem:[%s80_s0] sm:$0xff]  ;;  %v16_v3 = vld [vmem:[%s81_s1 + $0x8] sm:$0xff] }
   0x2   :  { %23 = vperm.xlu0 %37, %v14_v1   ;;  %v15_v2 = vld [vmem:[%s81_s1] sm:$0xff]  ;;  %v18_v5 = vld [vmem:[%s82_s2 + $0x8] sm:$0xff] }
   0x3   :  { %v17_v4 = vld [vmem:[%s82_s2] sm:$0xff]  ;;  %v20_v7 = vsub.f32 %v18_v5, %v16_v3 }
   0x4   :  { %v19_v6 = vsub.f32 %v17_v4, %v15_v2 }
  0x74   :  { %v24_v8 = vpop.permute.xlu0 %23 }
  0x75   :  { %v26_v9 = vmul.f32 %v24_v8, %v19_v6  ;;  %v27_v10 = vmul.f32 %v24_v8, %v20_v7 }
  0x77   :  { %v28_v11 = vadd.f32 %v26_v9, %v15_v2  ;;  %v29_v12 = vadd.f32 %v27_v10, %v16_v3 }
  0x79   :  { %30 = vst [vmem:[%s83_s3] sm:$0xff] %v28_v11 }
  0x7a   :  { %31 = vst [vmem:[%s83_s3 + $0x8] sm:$0xff] %v29_v12 }

</bundles_post_ra>
